<compile_context>
chip_gen: v5e
topology: v5e:2x2
jax: 0.10.0
libtpu: 0.0.40
codegen_flags: <defaults>
</compile_context>

<pallas_src>
import functools
import math

import jax
import jax.numpy as jnp
from jax.experimental import pallas as pl
from jax.experimental.pallas import tpu as pltpu


def _round_up(x: int, m: int) -> int:
    return ((x + m - 1) // m) * m


def _gelu_exact(x):
    # Matches torch.nn.GELU() / F.gelu default (erf-based, not tanh approx).
    return 0.5 * x * (1.0 + jax.lax.erf(x * (1.0 / math.sqrt(2.0))))


def _weighted_mlp_kernel(x_ref, tw_ref, w1_ref, b1_ref, w2_ref, b2_ref, o_ref,
                         *, use_bf16: bool):
    # x_ref : (tm, in_dim_p)    tile of token embeddings (zero-padded lanes)
    # tw_ref: (tm, 1)           per-token weight, ALREADY gelu-activated
    # w1/b1 : (in_dim_p, hidden_p), (1, hidden_p)   -- resident (constant idx map)
    # w2/b2 : (hidden_p, out_dim_p), (1, out_dim_p) -- resident
    # o_ref : (tm, out_dim_p)   lane-dense output tile
    x = x_ref[...]
    w1 = w1_ref[...]
    w2 = w2_ref[...]
    if use_bf16:
        x = x.astype(jnp.bfloat16)
        w1 = w1.astype(jnp.bfloat16)
        w2 = w2.astype(jnp.bfloat16)
    else:
        x = x.astype(jnp.float32)

    # Linear1 + exact GELU (f32 accumulation / activation).
    h = jnp.dot(x, w1, preferred_element_type=jnp.float32) + b1_ref[...]
    h = _gelu_exact(h)
    if use_bf16:
        h = h.astype(jnp.bfloat16)

    # Linear2.
    y = jnp.dot(h, w2, preferred_element_type=jnp.float32) + b2_ref[...]

    # Per-token weighting (weight already GELU'd in the wrapper).
    o_ref[...] = (y * tw_ref[...]).astype(o_ref.dtype)


@functools.partial(jax.jit, static_argnames=("tm", "use_bf16"))
def weighted_mlp_forward(token_ids, token_embeddings, vocab_weights,
                         w1, b1, w2, b2, *, tm=256, use_bf16=False):
    """Pallas implementation of WeightedMLP.forward.

    token_ids:        (B, S) int32
    token_embeddings: (B, S, in_dim)
    vocab_weights:    (n_vocab,)
    w1: (in_dim, hidden)  b1: (hidden,)  w2: (hidden, out_dim)  b2: (out_dim,)
    Returns weighted_embeddings of shape (B, S, out_dim).
    """
    B, S, in_dim = token_embeddings.shape
    hidden = w1.shape[1]
    out_dim = w2.shape[1]
    M = B * S

    # ---- lane-dense / MXU-friendly padding (zeros are mathematically inert) ----
    in_p = _round_up(in_dim, 128)
    hid_p = _round_up(hidden, 128)
    out_p = _round_up(out_dim, 128)

    # Row tile: large by default, shrunk (to a multiple of 8) for tiny inputs so
    # we do not pad M excessively; arbitrary M handled by zero-padding rows.
    tm_eff = min(tm, _round_up(M, 8))
    M_p = _round_up(M, tm_eff)

    f32 = jnp.float32
    x = token_embeddings.reshape(M, in_dim).astype(f32)
    x = jnp.pad(x, ((0, M_p - M), (0, in_p - in_dim)))

    # Precompute gelu over the vocab ONCE, then gather the activated weight.
    vocab_act = _gelu_exact(vocab_weights.astype(f32))
    tok_w = vocab_act[token_ids.reshape(M)].reshape(M, 1)
    tok_w = jnp.pad(tok_w, ((0, M_p - M), (0, 0)))

    w1_p = jnp.pad(w1.astype(f32), ((0, in_p - in_dim), (0, hid_p - hidden)))
    b1_p = jnp.pad(b1.astype(f32).reshape(1, hidden), ((0, 0), (0, hid_p - hidden)))
    w2_p = jnp.pad(w2.astype(f32), ((0, hid_p - hidden), (0, out_p - out_dim)))
    b2_p = jnp.pad(b2.astype(f32).reshape(1, out_dim), ((0, 0), (0, out_p - out_dim)))

    grid = (M_p // tm_eff,)

    out = pl.pallas_call(
        functools.partial(_weighted_mlp_kernel, use_bf16=use_bf16),
        out_shape=jax.ShapeDtypeStruct((M_p, out_p), token_embeddings.dtype),
        grid_spec=pltpu.PrefetchScalarGridSpec(
            num_scalar_prefetch=0,
            grid=grid,
            in_specs=[
                pl.BlockSpec((tm_eff, in_p), lambda i: (i, 0)),   # x tile
                pl.BlockSpec((tm_eff, 1), lambda i: (i, 0)),      # activated token weights
                pl.BlockSpec((in_p, hid_p), lambda i: (0, 0)),    # W1 (resident)
                pl.BlockSpec((1, hid_p), lambda i: (0, 0)),       # b1 (resident)
                pl.BlockSpec((hid_p, out_p), lambda i: (0, 0)),   # W2 (resident)
                pl.BlockSpec((1, out_p), lambda i: (0, 0)),       # b2 (resident)
            ],
            out_specs=pl.BlockSpec((tm_eff, out_p), lambda i: (i, 0)),
        ),
        compiler_params=pltpu.CompilerParams(
            dimension_semantics=("parallel",),
            vmem_limit_bytes=64 * 1024 * 1024,
        ),
    )(x, tok_w, w1_p, b1_p, w2_p, b2_p)

    return out[:M, :out_dim].reshape(B, S, out_dim)


def _reference_forward(token_ids, token_embeddings, vocab_weights, w1, b1, w2, b2):
    tok_w = _gelu_exact(vocab_weights[token_ids])                      # (B, S)
    h = _gelu_exact(token_embeddings @ w1 + b1)                        # (B, S, H)
    y = h @ w2 + b2                                                    # (B, S, out)
    return y * tok_w[..., None]


if __name__ == "__main__":
    # Small, deterministic synthetic setup (no checkpoint / tokenizer files).
    B, S = 2, 8
    in_dim, hidden, out_dim = 32, 64, 16
    n_vocab = 128

    key = jax.random.PRNGKey(0)
    k_emb, k_ids, k_w1, k_b1, k_w2, k_b2 = jax.random.split(key, 6)

    token_embeddings = jax.random.normal(k_emb, (B, S, in_dim), dtype=jnp.float32)
    token_ids = jax.random.randint(k_ids, (B, S), 0, n_vocab, dtype=jnp.int32)

    # nn.Linear-style init (deterministic via PRNGKey).
    w1 = jax.random.uniform(k_w1, (in_dim, hidden), jnp.float32,
                            -1.0 / math.sqrt(in_dim), 1.0 / math.sqrt(in_dim))
    b1 = jax.random.uniform(k_b1, (hidden,), jnp.float32,
                            -1.0 / math.sqrt(in_dim), 1.0 / math.sqrt(in_dim))
    w2 = jax.random.uniform(k_w2, (hidden, out_dim), jnp.float32,
                            -1.0 / math.sqrt(hidden), 1.0 / math.sqrt(hidden))
    b2 = jax.random.uniform(k_b2, (out_dim,), jnp.float32,
                            -1.0 / math.sqrt(hidden), 1.0 / math.sqrt(hidden))

    # Vocab weights: ones, with a few synthetic "stopword" ids set to 0.1.
    vocab_weights = jnp.ones((n_vocab,), jnp.float32)
    stopword_ids = jnp.array([3, 7, 11, 42, 99], dtype=jnp.int32)
    vocab_weights = vocab_weights.at[stopword_ids].set(0.1)

    # f32 path: exact match against the reference.  (The bf16 MXU path is
    # available via use_bf16=True for v6e/v7x; not exercised here to keep the
    # script's compile/run time minimal.)
    out = weighted_mlp_forward(token_ids, token_embeddings, vocab_weights,
                               w1, b1, w2, b2)
    out = jax.block_until_ready(out)

    ref = _reference_forward(token_ids, token_embeddings, vocab_weights,
                             w1, b1, w2, b2)
    assert out.shape == (B, S, out_dim)
    assert jnp.allclose(out, ref, atol=1e-5, rtol=1e-5), "mismatch vs reference (f32)"

    print("KERNEL_OK")
</pallas_src>

<mosaic_0001>
module attributes {stable_mosaic.version = 11 : i64} {
  func.func @_weighted_mlp_kernel(%arg0: i32, %arg1: memref<16x128xf32, #tpu.memory_space<vmem>>, %arg2: memref<16x1xf32, #tpu.memory_space<vmem>>, %arg3: memref<128x128xf32, #tpu.memory_space<vmem>>, %arg4: memref<1x128xf32, #tpu.memory_space<vmem>>, %arg5: memref<128x128xf32, #tpu.memory_space<vmem>>, %arg6: memref<1x128xf32, #tpu.memory_space<vmem>>, %arg7: memref<16x128xf32, #tpu.memory_space<vmem>>) attributes {dimension_semantics = [#tpu.dimension_semantics<parallel>], iteration_bounds = array<i64: 1>, scalar_prefetch = 0 : i64, scratch_operands = 0 : i64, tpu.core_type = #tpu.core_type<tc>, window_params = [{transform_indices = @transform_0, window_bounds = array<i64: 16, 128>}, {transform_indices = @transform_1, window_bounds = array<i64: 16, 1>}, {pipeline_mode = #tpu.pipeline_mode<synchronous>, transform_indices = @transform_2, window_bounds = array<i64: 128, 128>}, {pipeline_mode = #tpu.pipeline_mode<synchronous>, transform_indices = @transform_3, window_bounds = array<i64: 1, 128>}, {pipeline_mode = #tpu.pipeline_mode<synchronous>, transform_indices = @transform_4, window_bounds = array<i64: 128, 128>}, {pipeline_mode = #tpu.pipeline_mode<synchronous>, transform_indices = @transform_5, window_bounds = array<i64: 1, 128>}, {transform_indices = @transform_6, window_bounds = array<i64: 16, 128>}]} {
    %c0 = arith.constant 0 : index
    %c0_0 = arith.constant 0 : index
    %0 = vector.load %arg1[%c0, %c0_0] : memref<16x128xf32, #tpu.memory_space<vmem>>, vector<16x128xf32>
    %c0_1 = arith.constant 0 : index
    %c0_2 = arith.constant 0 : index
    %1 = vector.load %arg3[%c0_1, %c0_2] : memref<128x128xf32, #tpu.memory_space<vmem>>, vector<128x128xf32>
    %c0_3 = arith.constant 0 : index
    %c0_4 = arith.constant 0 : index
    %2 = vector.load %arg5[%c0_3, %c0_4] : memref<128x128xf32, #tpu.memory_space<vmem>>, vector<128x128xf32>
    %cst = arith.constant dense<0.000000e+00> : vector<16x128xf32>
    %3 = tpu.matmul %0, %1, %cst {dimension_numbers = #tpu.dot_dimension_numbers<[1], [0], [0], [1], [0, 0, 1, 1], [], []>} : vector<16x128xf32>, vector<128x128xf32>, vector<16x128xf32> -> vector<16x128xf32>
    %c0_5 = arith.constant 0 : index
    %c0_6 = arith.constant 0 : index
    %4 = vector.load %arg4[%c0_5, %c0_6] : memref<1x128xf32, #tpu.memory_space<vmem>>, vector<1x128xf32>
    %5 = vector.broadcast %4 : vector<1x128xf32> to vector<16x128xf32>
    %6 = arith.addf %3, %5 : vector<16x128xf32>
    %cst_7 = arith.constant 5.000000e-01 : f32
    %7 = vector.broadcast %cst_7 : f32 to vector<16x128xf32>
    %8 = arith.mulf %7, %6 : vector<16x128xf32>
    %cst_8 = arith.constant 0.707106769 : f32
    %9 = vector.broadcast %cst_8 : f32 to vector<16x128xf32>
    %10 = arith.mulf %6, %9 : vector<16x128xf32>
    %11 = math.erf %10 : vector<16x128xf32>
    %cst_9 = arith.constant 1.000000e+00 : f32
    %12 = vector.broadcast %cst_9 : f32 to vector<16x128xf32>
    %13 = arith.addf %12, %11 : vector<16x128xf32>
    %14 = arith.mulf %8, %13 : vector<16x128xf32>
    %cst_10 = arith.constant dense<0.000000e+00> : vector<16x128xf32>
    %15 = tpu.matmul %14, %2, %cst_10 {dimension_numbers = #tpu.dot_dimension_numbers<[1], [0], [0], [1], [0, 0, 1, 1], [], []>} : vector<16x128xf32>, vector<128x128xf32>, vector<16x128xf32> -> vector<16x128xf32>
    %c0_11 = arith.constant 0 : index
    %c0_12 = arith.constant 0 : index
    %16 = vector.load %arg6[%c0_11, %c0_12] : memref<1x128xf32, #tpu.memory_space<vmem>>, vector<1x128xf32>
    %17 = vector.broadcast %16 : vector<1x128xf32> to vector<16x128xf32>
    %18 = arith.addf %15, %17 : vector<16x128xf32>
    %c0_13 = arith.constant 0 : index
    %c0_14 = arith.constant 0 : index
    %19 = vector.load %arg2[%c0_13, %c0_14] : memref<16x1xf32, #tpu.memory_space<vmem>>, vector<16x1xf32>
    %20 = vector.broadcast %19 : vector<16x1xf32> to vector<16x128xf32>
    %21 = arith.mulf %18, %20 : vector<16x128xf32>
    %c0_15 = arith.constant 0 : index
    %c0_16 = arith.constant 0 : index
    %22 = vector.load %arg7[%c0_15, %c0_16] : memref<16x128xf32, #tpu.memory_space<vmem>>, vector<16x128xf32>
    tpu.vector_store %arg7[%c0_15, %c0_16], %21 {strides = array<i32>} : memref<16x128xf32, #tpu.memory_space<vmem>>, vector<16x128xf32>,
    return
  }
  func.func @transform_0(%arg0: i32) -> (i32, i32) {
    %c0_i32 = arith.constant 0 : i32
    %c0_i32_0 = arith.constant 0 : i32
    return %arg0, %c0_i32 : i32, i32
  }
  func.func @transform_1(%arg0: i32) -> (i32, i32) {
    %c0_i32 = arith.constant 0 : i32
    %c0_i32_0 = arith.constant 0 : i32
    return %arg0, %c0_i32 : i32, i32
  }
  func.func @transform_2(%arg0: i32) -> (i32, i32) {
    %c0_i32 = arith.constant 0 : i32
    %c0_i32_0 = arith.constant 0 : i32
    %c0_i32_1 = arith.constant 0 : i32
    return %c0_i32, %c0_i32_0 : i32, i32
  }
  func.func @transform_3(%arg0: i32) -> (i32, i32) {
    %c0_i32 = arith.constant 0 : i32
    %c0_i32_0 = arith.constant 0 : i32
    %c0_i32_1 = arith.constant 0 : i32
    return %c0_i32, %c0_i32_0 : i32, i32
  }
  func.func @transform_4(%arg0: i32) -> (i32, i32) {
    %c0_i32 = arith.constant 0 : i32
    %c0_i32_0 = arith.constant 0 : i32
    %c0_i32_1 = arith.constant 0 : i32
    return %c0_i32, %c0_i32_0 : i32, i32
  }
  func.func @transform_5(%arg0: i32) -> (i32, i32) {
    %c0_i32 = arith.constant 0 : i32
    %c0_i32_0 = arith.constant 0 : i32
    %c0_i32_1 = arith.constant 0 : i32
    return %c0_i32, %c0_i32_0 : i32, i32
  }
  func.func @transform_6(%arg0: i32) -> (i32, i32) {
    %c0_i32 = arith.constant 0 : i32
    %c0_i32_0 = arith.constant 0 : i32
    return %arg0, %c0_i32 : i32, i32
  }
}

</mosaic_0001>

<bundles_post_ra>
// kernel: weighted_mlp_forward.1
= control target key start
LH: loop header
LB: loop body
LE: loop exit
PB: predicated region body
PF: predicated region fallthrough
CT: control target
= control target key end

     0   :  { %s447_s2 = inlined_call_operand.vmem [shape: f32[128,128], index: 2, kind: input, shape index: {}]   ;;  %s448_s3 = inlined_call_operand.vmem [shape: f32[1,128], index: 3, kind: input, shape index: {}]   ;;  %s449_s0 = inlined_call_operand.vmem [shape: f32[16,128], index: 0, kind: input, shape index: {}]   ;;  %s450_s4 = inlined_call_operand.vmem [shape: f32[128,128], index: 4, kind: input, shape index: {}]   ;;  %s451_s5 = inlined_call_operand.vmem [shape: f32[1,128], index: 5, kind: input, shape index: {}]   ;;  %s452_s1 = inlined_call_operand.vmem [shape: f32[16,1], index: 1, kind: input, shape index: {}]   ;;  %s453_s6 = inlined_call_operand.vmem [shape: f32[16,128], index: 6, kind: output, shape index: {}]  }
   0x1   :  { %v40_v0 = vld [vmem:[%s447_s2 + $0x78] sm:$0xff]  ;;  %v39_v1 = vld [vmem:[%s447_s2 + $0x70] sm:$0xff]  ;;  %v38_v2 = vld [vmem:[%s447_s2 + $0x68] sm:$0xff] }
   0x2   :  { %61 = vmatpush.msra.mxu0 %v40_v0  ;;  %221 = vmatpush.msra.mxu2 %v40_v0  ;;  %v37_v3 = vld [vmem:[%s447_s2 + $0x60] sm:$0xff]  ;;  %v36_v4 = vld [vmem:[%s447_s2 + $0x58] sm:$0xff]  ;;  %v35_v5 = vld [vmem:[%s447_s2 + $0x50] sm:$0xff] }
   0x3   :  { %v34_v6 = vld [vmem:[%s447_s2 + $0x48] sm:$0xff]  ;;  %v33_v7 = vld [vmem:[%s447_s2 + $0x40] sm:$0xff]  ;;  %v32_v8 = vld [vmem:[%s447_s2 + $0x38] sm:$0xff] }
   0x4   :  { %62 = vmatpush.msra.mxu0 %v39_v1  ;;  %222 = vmatpush.msra.mxu2 %v39_v1  ;;  %v31_v9 = vld [vmem:[%s447_s2 + $0x30] sm:$0xff]  ;;  %v30_v10 = vld [vmem:[%s447_s2 + $0x28] sm:$0xff]  ;;  %v29_v11 = vld [vmem:[%s447_s2 + $0x20] sm:$0xff] }
   0x5   :  { %v28_v12 = vld [vmem:[%s447_s2 + $0x18] sm:$0xff]  ;;  %v27_v13 = vld [vmem:[%s447_s2 + $0x10] sm:$0xff]  ;;  %v26_v14 = vld [vmem:[%s447_s2 + $0x8] sm:$0xff] }
   0x6   :  { %63 = vmatpush.msra.mxu0 %v38_v2  ;;  %223 = vmatpush.msra.mxu2 %v38_v2  ;;  %v25_v15 = vld [vmem:[%s447_s2] sm:$0xff]  ;;  %v24_v17 = vld [vmem:[%s449_s0 + $0x8] sm:$0xff]  ;;  %v56_v18 = vld [vmem:[%s450_s4 + $0x78] sm:$0xff] }
   0x7   :  { %v23_v16 = vld [vmem:[%s449_s0] sm:$0xff]  ;;  %176 = vmatpush.msra.mxu1 %v56_v18  ;;  %237 = vmatpush.msra.mxu3 %v56_v18  ;;  %v55_v19 = vld [vmem:[%s450_s4 + $0x70] sm:$0xff]  ;;  %v54_v20 = vld [vmem:[%s450_s4 + $0x68] sm:$0xff] }
   0x8   :  { %64 = vmatpush.msra.mxu0 %v37_v3  ;;  %224 = vmatpush.msra.mxu2 %v37_v3  ;;  %v53_v21 = vld [vmem:[%s450_s4 + $0x60] sm:$0xff]  ;;  %v52_v23 = vld [vmem:[%s450_s4 + $0x58] sm:$0xff]  ;;  %v51_v25 = vld [vmem:[%s450_s4 + $0x50] sm:$0xff] }
   0x9   :  { %177 = vmatpush.msra.mxu1 %v55_v19  ;;  %238 = vmatpush.msra.mxu3 %v55_v19  ;;  %v255_v22 = vld [vmem:[%s448_s3] ss:$0 sm:$0xff]  ;;  %v50_v27 = vld [vmem:[%s450_s4 + $0x48] sm:$0xff]  ;;  %v48_v30 = vld [vmem:[%s450_s4 + $0x38] sm:$0xff] }
   0xa   :  { %65 = vmatpush.msra.mxu0 %v36_v4  ;;  %225 = vmatpush.msra.mxu2 %v36_v4  ;;  %v49_v29 = vld [vmem:[%s450_s4 + $0x40] sm:$0xff]  ;;  %v47_v33 = vld [vmem:[%s450_s4 + $0x30] sm:$0xff]  ;;  %v46_v36 = vld [vmem:[%s450_s4 + $0x28] sm:$0xff] }
   0xb   :  { %178 = vmatpush.msra.mxu1 %v54_v20  ;;  %239 = vmatpush.msra.mxu3 %v54_v20  ;;  %v45_v39 = vld [vmem:[%s450_s4 + $0x20] sm:$0xff]  ;;  %v44_v43 = vld [vmem:[%s450_s4 + $0x18] sm:$0xff]  ;;  %v43_v47 = vld [vmem:[%s450_s4 + $0x10] sm:$0xff] }
   0xc   :  { %66 = vmatpush.msra.mxu0 %v35_v5  ;;  %226 = vmatpush.msra.mxu2 %v35_v5  ;;  %v42_v52 = vld [vmem:[%s450_s4 + $0x8] sm:$0xff]  ;;  %v41_v56 = vld [vmem:[%s450_s4] sm:$0xff] }
   0xd   :  { %179 = vmatpush.msra.mxu1 %v53_v21  ;;  %240 = vmatpush.msra.mxu3 %v53_v21  ;;  %v200_v18 = vld [vmem:[%s452_s1 + $0x8] sm:$0xff] }
   0xe   :  { %67 = vmatpush.msra.mxu0 %v34_v6  ;;  %227 = vmatpush.msra.mxu2 %v34_v6 }
   0xf   :  { %180 = vmatpush.msra.mxu1 %v52_v23  ;;  %241 = vmatpush.msra.mxu3 %v52_v23 }
  0x10   :  { %68 = vmatpush.msra.mxu0 %v33_v7  ;;  %228 = vmatpush.msra.mxu2 %v33_v7 }
  0x11   :  { %181 = vmatpush.msra.mxu1 %v51_v25  ;;  %242 = vmatpush.msra.mxu3 %v51_v25 }
  0x12   :  { %69 = vmatpush.msra.mxu0 %v32_v8  ;;  %229 = vmatpush.msra.mxu2 %v32_v8 }
  0x13   :  { %182 = vmatpush.msra.mxu1 %v50_v27  ;;  %243 = vmatpush.msra.mxu3 %v50_v27 }
  0x14   :  { %70 = vmatpush.msra.mxu0 %v31_v9  ;;  %230 = vmatpush.msra.mxu2 %v31_v9 }
  0x15   :  { %183 = vmatpush.msra.mxu1 %v49_v29  ;;  %244 = vmatpush.msra.mxu3 %v49_v29 }
  0x16   :  { %71 = vmatpush.msra.mxu0 %v30_v10  ;;  %231 = vmatpush.msra.mxu2 %v30_v10  ;;  %v199_v10 = vld [vmem:[%s452_s1] sm:$0xff] }
  0x17   :  { %184 = vmatpush.msra.mxu1 %v48_v30  ;;  %245 = vmatpush.msra.mxu3 %v48_v30 }
  0x18   :  { %72 = vmatpush.msra.mxu0 %v29_v11  ;;  %232 = vmatpush.msra.mxu2 %v29_v11 }
  0x19   :  { %185 = vmatpush.msra.mxu1 %v47_v33  ;;  %246 = vmatpush.msra.mxu3 %v47_v33 }
  0x1a   :  { %73 = vmatpush.msra.mxu0 %v28_v12  ;;  %233 = vmatpush.msra.mxu2 %v28_v12 }
  0x1b   :  { %186 = vmatpush.msra.mxu1 %v46_v36  ;;  %247 = vmatpush.msra.mxu3 %v46_v36 }
  0x1c   :  { %74 = vmatpush.msra.mxu0 %v27_v13  ;;  %234 = vmatpush.msra.mxu2 %v27_v13  ;;  %v261_v13 = vmov 0  }
  0x1d   :  { %187 = vmatpush.msra.mxu1 %v45_v39  ;;  %248 = vmatpush.msra.mxu3 %v45_v39 }
  0x1e   :  { %75 = vmatpush.msra.mxu0 %v26_v14  ;;  %235 = vmatpush.msra.mxu2 %v26_v14 }
  0x1f   :  { %188 = vmatpush.msra.mxu1 %v44_v43  ;;  %249 = vmatpush.msra.mxu3 %v44_v43 }
  0x20   :  { %76 = vmatpush.msra.mxu0 %v25_v15  ;;  %236 = vmatpush.msra.mxu2 %v25_v15 }
  0x21   :  { %77 = vmatmul.f32.vlgmr.msra.gmra.mxu0 %v23_v16  ;;  %80 = vmatmul.f32.vlgmr.msra.gmra.mxu2 %v24_v17 }
  0x22   :  { %189 = vmatpush.msra.mxu1 %v43_v47  ;;  %250 = vmatpush.msra.mxu3 %v43_v47 }
  0x23   :  { %254 = vset.pattern.permute.xlu0 %v261_v13 }
  0x24   :  { %190 = vmatpush.msra.mxu1 %v42_v52  ;;  %251 = vmatpush.msra.mxu3 %v42_v52 }
  0x25   :  { %203 = vperm.xlu0 %254, %v199_v10  }
  0x26   :  { %191 = vmatpush.msra.mxu1 %v41_v56  ;;  %252 = vmatpush.msra.mxu3 %v41_v56 }
  0x2d   :  { %208 = vperm.xlu0 %254, %v200_v18  }
  0x9e   :  { %v78_v24 = vpop.f32.mrf.mxu0 }
  0x9f   :  { %v372_v26 = vadd.f32 %v255_v22, %v78_v24 }
  0xa1   :  { %v378_v28 = vmul.f32 0.70710677, %v372_v26 }
  0xa3   :  { %v88_v31 = vmul.f32 %v378_v28, %v378_v28 }
  0xa4   :  { %v81_v32 = vpop.f32.mrf.mxu2 }
  0xa5   :  { %v391_v34 = vmin.f32 %v88_v31, 16.0  ;;  %v393_v35 = vadd.f32 %v255_v22, %v81_v32 }
  0xa7   :  { %v90_v37 = vmul.f32 2.1237322e-06, %v391_v34  ;;  %v400_v38 = vmul.f32 0.70710677, %v393_v35  ;;  %v101_v40 = vmul.f32 3.8918573e-05, %v391_v34 }
  0xa8   :  { %v85_v56 = vmul.f32 0.5, %v393_v35 }
  0xa9   :  { %v91_v41 = vadd.f32 0.00028619796, %v90_v37  ;;  %v128_v42 = vmul.f32 %v400_v38, %v400_v38  ;;  %v102_v44 = vadd.f32 0.001143296, %v101_v40 }
  0xab   :  { %v92_v45 = vmul.f32 %v91_v41, %v391_v34  ;;  %v129_v46 = vmin.f32 %v128_v42, 16.0  ;;  %v103_v48 = vmul.f32 %v102_v44, %v391_v34 }
  0xad   :  { %v130_v49 = vmul.f32 2.1237322e-06, %v129_v46  ;;  %v141_v50 = vmul.f32 3.8918573e-05, %v129_v46  ;;  %v93_v51 = vadd.f32 0.0036580483, %v92_v45 }
  0xae   :  { %v104_v53 = vadd.f32 0.014752088, %v103_v48 }
  0xaf   :  { %v131_v54 = vadd.f32 0.00028619796, %v130_v49  ;;  %v142_v55 = vadd.f32 0.001143296, %v141_v50  ;;  %v94_v60 = vmul.f32 %v93_v51, %v391_v34  ;;  %v84_v50 = vmul.f32 0.5, %v372_v26 }
  0xb0   :  { %v105_v57 = vmul.f32 %v104_v53, %v391_v34 }
  0xb1   :  { %v132_v58 = vmul.f32 %v131_v54, %v129_v46  ;;  %v143_v59 = vmul.f32 %v142_v55, %v129_v46  ;;  %v95_v2 = vadd.f32 0.05243302, %v94_v60 }
  0xb2   :  { %v106_v61 = vadd.f32 0.112945676, %v105_v57 }
  0xb3   :  { %v133_v62 = vadd.f32 0.0036580483, %v132_v58  ;;  %v144_v63 = vadd.f32 0.014752088, %v143_v59  ;;  %v96_v8 = vmul.f32 %v95_v2, %v391_v34  ;;  %v256_v59 = vld [vmem:[%s451_s5] ss:$0 sm:$0xff] }
  0xb4   :  { %v107_v0 = vmul.f32 %v106_v61, %v391_v34  ;;  %v204_v61 = vpop.permute.xlu0 %203 }
  0xb5   :  { %v145_v1 = vmul.f32 %v144_v63, %v129_v46  ;;  %v134_v4 = vmul.f32 %v133_v62, %v129_v46  ;;  %v97_v15 = vadd.f32 0.18741608, %v96_v8 }
  0xb6   :  { %v108_v3 = vadd.f32 0.4994258, %v107_v0 }
  0xb7   :  { %v146_v5 = vadd.f32 0.112945676, %v145_v1  ;;  %v135_v11 = vadd.f32 0.05243302, %v134_v4  ;;  %v98_v20 = vmul.f32 %v97_v15, %v391_v34 }
  0xb8   :  { %v109_v6 = vmul.f32 %v108_v3, %v391_v34 }
  0xb9   :  { %v147_v7 = vmul.f32 %v146_v5, %v129_v46  ;;  %v136_v16 = vmul.f32 %v135_v11, %v129_v46  ;;  %v99_v24 = vadd.f32 1.1283791, %v98_v20 }
  0xba   :  { %v110_v9 = vadd.f32 1.0, %v109_v6 }
  0xbb   :  { %v148_v12 = vadd.f32 0.4994258, %v147_v7  ;;  %v137_v21 = vadd.f32 0.18741608, %v136_v16  ;;  %v100_v36 = vmul.f32 %v99_v24, %v378_v28 }
  0xbc   :  { %257 = vrcp.f32 %v110_v9  ;;  %v122_v25 = vand.u32 2147483648, %v110_v9  ;;  %v120_v31 = vand.u32 2147483647, %v110_v9  ;;  %vm116_vm1 = vweird.f32 %v110_v9  ;;  %v209_v0 = vpop.permute.xlu0 %208 }
  0xbd   :  { %v149_v14 = vmul.f32 %v148_v12, %v129_v46  ;;  %v138_v29 = vmul.f32 %v137_v21, %v129_v46 }
  0xbe   :  { %v123_v37 = vor.u32 1.1754944e-38, %v122_v25  ;;  %vm121_vm3 = vcmp.eq.f32.partialorder %v120_v31, 8.507059e+37 }
  0xbf   :  { %v150_v17 = vadd.f32 1.0, %v149_v14  ;;  %v139_v34 = vadd.f32 1.1283791, %v138_v29 }
  0xc1   :  { %259 = vrcp.f32 %v150_v17  ;;  %v162_v41 = vand.u32 2147483648, %v150_v17  ;;  %v160_v44 = vand.u32 2147483647, %v150_v17  ;;  %vm156_vm5 = vweird.f32 %v150_v17 }
  0xc2   :  { %v258_v19 = vpop.eup %257  ;;  %v140_v49 = vmul.f32 %v139_v34, %v400_v38 }
  0xc3   :  { %v112_v22 = vmul.f32 %v258_v19, %v110_v9  ;;  %vm117_vm0 = vweird.f32 %v258_v19  ;;  %v163_v48 = vor.u32 1.1754944e-38, %v162_v41  ;;  %vm161_vm7 = vcmp.eq.f32.partialorder %v160_v44, 8.507059e+37 }
  0xc4   :  { %vm118_vm2 = vmor %vm116_vm1, %vm117_vm0 }
  0xc5   :  { %v113_v23 = vsub.f32 1.0, %v112_v22 }
  0xc7   :  { %v260_v27 = vpop.eup %259  ;;  %v114_v30 = vmul.f32 %v258_v19, %v113_v23 }
  0xc8   :  { %v152_v32 = vmul.f32 %v260_v27, %v150_v17  ;;  %vm157_vm4 = vweird.f32 %v260_v27 }
  0xc9   :  { %v115_v33 = vadd.f32 %v258_v19, %v114_v30  ;;  %vm158_vm6 = vmor %vm156_vm5, %vm157_vm4 }
  0xca   :  { %v153_v39 = vsub.f32 1.0, %v152_v32 }
  0xcb   :  { %v119_v40 = vsel %vm118_vm2, %v258_v19, %v115_v33 }
  0xcc   :  { %v124_v42 = vsel %vm121_vm3, %v123_v37, %v119_v40  ;;  %v154_v43 = vmul.f32 %v260_v27, %v153_v39 }
  0xcd   :  { %v125_v45 = vmul.f32 %v124_v42, %v100_v36 }
  0xce   :  { %v155_v46 = vadd.f32 %v260_v27, %v154_v43 }
  0xcf   :  { %v219_v47 = vclamps-f32 %v125_v45, 1.0 }
  0xd0   :  { %v159_v28 = vsel %vm158_vm6, %v260_v27, %v155_v46 }
  0xd1   :  { %v168_v51 = vadd.f32 1.0, %v219_v47  ;;  %v164_v52 = vsel %vm161_vm7, %v163_v48, %v159_v28 }
  0xd2   :  { %v165_v53 = vmul.f32 %v164_v52, %v140_v49 }
  0xd3   :  { %v170_v54 = vmul.f32 %v168_v51, %v84_v50 }
  0xd4   :  { %v220_v55 = vclamps-f32 %v165_v53, 1.0 }
  0xd5   :  { %192 = vmatmul.f32.vlgmr.msra.gmra.mxu1 %v170_v54 }
  0xd6   :  { %v169_v57 = vadd.f32 1.0, %v220_v55 }
  0xd8   :  { %v171_v58 = vmul.f32 %v169_v57, %v85_v56 }
  0xda   :  { %195 = vmatmul.f32.vlgmr.msra.gmra.mxu3 %v171_v58 }
 0x152   :  { %v193_v38 = vpop.f32.mrf.mxu1 }
 0x153   :  { %v194_v60 = vadd.f32 %v256_v59, %v193_v38 }
 0x155   :  { %v211_v62 = vmul.f32 %v204_v61, %v194_v60 }
 0x157   :  { %213 = vst [vmem:[%s453_s6] sm:$0xff] %v211_v62 }
 0x15d   :  { %v196_v26 = vpop.f32.mrf.mxu3 }
 0x15e   :  { %v197_v63 = vadd.f32 %v256_v59, %v196_v26 }
 0x160   :  { %v212_v1 = vmul.f32 %v209_v0, %v197_v63 }
 0x162   :  { %214 = vst [vmem:[%s453_s6 + $0x8] sm:$0xff] %v212_v1 }

</bundles_post_ra>
